<compile_context>
chip_gen: v7x
topology: tpu7x:2x2x1
jax: 0.10.0
libtpu: 0.0.40
codegen_flags: <defaults>
</compile_context>

<pallas_src>
import math
from functools import partial

import jax
import jax.numpy as jnp
from jax import lax
from jax.experimental import pallas as pl
from jax.experimental.pallas import tpu as pltpu


def _round_up(v, m):
    return ((v + m - 1) // m) * m


def _length_regulator_kernel(cum_ref, x_ref, o_ref, *, precision):
    """Grid = (batch, T_out tile).

    cum_ref: (1, 2, t_x_pad) int32 -- row 0: exclusive cumsum, row 1: inclusive cumsum
    x_ref:   (1, t_x_pad, d)       -- phoneme features (resident across T_out tiles)
    o_ref:   (1, TQ, d)            -- current T_out tile of the expanded output
    """
    tq = o_ref.shape[1]
    t_x = x_ref.shape[1]

    # Absolute output-frame indices covered by this tile.
    row0 = pl.program_id(1) * tq
    j = row0 + lax.broadcasted_iota(jnp.int32, (tq, t_x), 0)      # (TQ, t_x)

    c = cum_ref[0]                                                # (2, t_x)
    lo = c[0:1, :]                                                # (1, t_x)
    hi = c[1:2, :]                                                # (1, t_x)

    x = x_ref[0]                                                  # (t_x, d)

    # M^T tile: M_T[j, i] = 1 iff lo[i] <= j < hi[i].  0/1 is exact in bf16,
    # so build the mask in x's dtype to hit the native MXU path.
    m_t = jnp.logical_and(j >= lo, j < hi).astype(x.dtype)        # (TQ, t_x)

    out = jnp.dot(m_t, x, precision=precision,
                  preferred_element_type=jnp.float32)             # (TQ, d) f32 acc
    o_ref[0] = out.astype(o_ref.dtype)


def _vmem_budget():
    """(physical_vmem, vmem_limit_bytes, usable_budget_for_our_buffers)."""
    try:
        cap = int(pltpu.get_tpu_info().vmem_capacity_bytes)
    except Exception:
        cap = 64 * 1024 * 1024                       # conservative (v7x per-TC)
    if cap >= 100 * 1024 * 1024:                     # v5e / v6e: 128 MiB physical
        limit = 96 * 1024 * 1024
    else:                                            # v7x: 64 MiB per TensorCore
        limit = (cap * 3) // 4                       # ~48 MiB
    budget = int(limit * 0.85)                       # headroom for Mosaic scratch
    return cap, limit, budget


def _pick_tq(t_out, b, fixed_bytes, per_row_bytes, budget):
    """Largest output tile that (a) divides t_out, (b) fits the VMEM budget,
    (c) keeps the total grid at >= ~8 steps; prefer 128-aligned, then 16/8."""
    per_row_bytes = max(per_row_bytes, 1)
    max_fit = (budget - fixed_bytes) // per_row_bytes
    max_fit = int(max(8, min(max_fit, 1024, t_out)))
    soft = max(128, (b * t_out) // 8)                # >= ~8 grid steps overall
    cap = min(max_fit, soft)

    cands = [q for q in range(8, min(t_out, cap) + 1, 8) if t_out % q == 0]
    if t_out <= cap:
        cands.append(t_out)                          # full-extent block is legal
    if not cands:
        return None
    for align in (128, 16, 8, 1):
        aligned = [q for q in cands if q % align == 0]
        if aligned:
            return max(aligned)
    return max(cands)


def length_regulator(x, repeat_count, output_max_seq_len):
    """Pallas implementation of LengthRegulator.forward.

    Args:
      x:            (b, t_x, d) float array (bf16 or f32; kept in native dtype).
      repeat_count: (b, t_x) integer durations (non-negative).
      output_max_seq_len: static Python int >= max total duration (already
        rounded to `is_multiple_of` by the caller, as in the PyTorch code).

    Returns:
      (out, lengths): out (b, T_out, d) with x.dtype, lengths (b,) int32.
    """
    b, t_x, d = x.shape
    t_out = int(output_max_seq_len)

    rc = repeat_count.astype(jnp.int32)
    cum_hi = jnp.cumsum(rc, axis=1)                   # inclusive cumsum (b, t_x)
    cum_lo = cum_hi - rc                              # exclusive cumsum (b, t_x)
    lengths = jnp.max(cum_hi, axis=1)                 # (b,)

    # Single packed scalar-metadata input: (b, 2, t_x) int32.
    cum = jnp.stack([cum_lo, cum_hi], axis=1)

    # Pad the contraction dim to a multiple of 128 (small input side only).
    t_x_pad = _round_up(t_x, 128)
    if t_x_pad != t_x:
        cum = jnp.pad(cum, ((0, 0), (0, 0), (0, t_x_pad - t_x)))
        x_p = jnp.pad(x, ((0, 0), (0, t_x_pad - t_x), (0, 0)))
    else:
        x_p = x

    isz = jnp.dtype(x.dtype).itemsize
    d_lane = _round_up(d, 128)                        # VMEM lane-layout width

    # ---- VMEM accounting (all live buffers of one grid step) --------------
    vmem_cap, vmem_limit, budget = _vmem_budget()
    fixed_bytes = (
        2 * 8 * t_x_pad * 4                           # cum block (2 bufs, 2->8 sublanes)
        + 2 * t_x_pad * d_lane * isz                  # x block (2 bufs, resident)
    )
    per_row_bytes = (
        2 * d_lane * isz                              # out block (2 bufs)
        + t_x_pad * isz                               # one-hot mask row
        + 2 * t_x_pad * 4                             # int32 iota + compare temps
        + d_lane * 4                                  # f32 accumulator row
    )

    tq = _pick_tq(t_out, b, fixed_bytes, per_row_bytes, budget)
    if tq is None:
        # Rare fallback (no usable multiple-of-8 divisor under the VMEM cap):
        # pad T_out and slice afterwards.
        tq = int(max(8, min(1024, ((budget - fixed_bytes) // per_row_bytes) // 8 * 8)))
        t_out_pad = _round_up(t_out, tq)
    else:
        t_out_pad = t_out
    n_q = t_out_pad // tq

    # Make the compiler's scoped-VMEM limit cover what we actually use.
    needed = fixed_bytes + tq * per_row_bytes
    vmem_limit = int(min(vmem_cap, max(vmem_limit, needed + (4 << 20))))

    # f32 path must not be routed through bf16 MXU passes (exact row copy).
    prec = lax.Precision.HIGHEST if x.dtype == jnp.float32 else None

    cost = pl.CostEstimate(
        flops=2 * b * t_out_pad * t_x_pad * d,
        transcendentals=0,
        bytes_accessed=(x_p.size * isz + cum.size * 4
                        + b * t_out_pad * d * isz),
    )

    out = pl.pallas_call(
        partial(_length_regulator_kernel, precision=prec),
        out_shape=jax.ShapeDtypeStruct((b, t_out_pad, d), x.dtype),
        grid_spec=pltpu.PrefetchScalarGridSpec(
            num_scalar_prefetch=0,
            grid=(b, n_q),
            in_specs=[
                # cum / x blocks depend only on the batch axis -> stay resident
                # across all T_out tiles of the same batch element.
                pl.BlockSpec((1, 2, t_x_pad), lambda bi, qi: (bi, 0, 0)),
                pl.BlockSpec((1, t_x_pad, d), lambda bi, qi: (bi, 0, 0)),
            ],
            out_specs=pl.BlockSpec((1, tq, d), lambda bi, qi: (bi, qi, 0)),
        ),
        compiler_params=pltpu.CompilerParams(
            dimension_semantics=("parallel", "parallel"),
            vmem_limit_bytes=vmem_limit,
        ),
        cost_estimate=cost,
    )(cum, x_p)

    if t_out_pad != t_out:
        out = out[:, :t_out, :]
    return out, lengths


def _reference(x, repeat_count, t_out):
    """Pure-JAX reference matching the PyTorch semantics (f32 compute)."""
    rc = repeat_count.astype(jnp.int32)
    cum_hi = jnp.cumsum(rc, axis=1)
    cum_lo = cum_hi - rc
    j = jnp.arange(t_out)[None, None, :]                              # (1, 1, T_out)
    M = ((j >= cum_lo[:, :, None]) & (j < cum_hi[:, :, None])).astype(jnp.float32)
    out = jnp.einsum("bij,bid->bjd", M, x.astype(jnp.float32))
    return out, jnp.max(cum_hi, axis=1)


if __name__ == "__main__":
    key = jax.random.PRNGKey(0)
    kx, kd, kx2, kd2 = jax.random.split(key, 4)

    # ---- small config matching the module's typical call (f32) -----------
    b, t_x, d = 2, 8, 32
    is_multiple_of = 8
    x = jax.random.normal(kx, (b, t_x, d), dtype=jnp.float32)
    repeat_count = jax.random.randint(kd, (b, t_x), minval=0, maxval=5, dtype=jnp.int32)

    # Static output length (resolved from concrete durations, like the eager
    # PyTorch code), rounded up to is_multiple_of.
    max_total = int(jnp.max(jnp.cumsum(repeat_count, axis=1)))
    t_out = max(is_multiple_of, int(math.ceil(max_total / is_multiple_of) * is_multiple_of))

    out, lengths = length_regulator(x, repeat_count, t_out)
    out = jax.block_until_ready(out)
    lengths = jax.block_until_ready(lengths)
    ref_out, ref_len = _reference(x, repeat_count, t_out)
    assert out.shape == (b, t_out, d)
    assert out.dtype == x.dtype
    assert jnp.allclose(out, ref_out, atol=1e-5, rtol=1e-5)
    assert jnp.array_equal(lengths, ref_len)

    # ---- bf16 path (native-dtype mask / matmul / writeback) --------------
    xb = x.astype(jnp.bfloat16)
    outb, lengths_b = length_regulator(xb, repeat_count, t_out)
    outb = jax.block_until_ready(outb)
    refb_out, refb_len = _reference(xb, repeat_count, t_out)
    assert outb.dtype == jnp.bfloat16
    assert jnp.allclose(outb.astype(jnp.float32), refb_out, atol=1e-6, rtol=0)
    assert jnp.array_equal(lengths_b, refb_len)

    # ---- multi-tile grid config (exercises TQ selection / resident x) ----
    b2, t_x2, d2 = 1, 16, 128
    x2 = jax.random.normal(kx2, (b2, t_x2, d2), dtype=jnp.float32)
    rc2 = jax.random.randint(kd2, (b2, t_x2), minval=8, maxval=72, dtype=jnp.int32)
    max_total2 = int(jnp.max(jnp.cumsum(rc2, axis=1)))
    t_out2 = max(8, int(math.ceil(max_total2 / 8) * 8))
    out2, len2 = length_regulator(x2, rc2, t_out2)
    out2 = jax.block_until_ready(out2)
    ref2_out, ref2_len = _reference(x2, rc2, t_out2)
    assert out2.shape == (b2, t_out2, d2)
    assert jnp.allclose(out2, ref2_out, atol=1e-5, rtol=1e-5)
    assert jnp.array_equal(len2, ref2_len)

    print("KERNEL_OK")
</pallas_src>

<mosaic_0001>
module attributes {stable_mosaic.version = 11 : i64} {
  func.func @_length_regulator_kernel(%arg0: i32, %arg1: i32, %arg2: memref<1x2x128xi32, #tpu.memory_space<vmem>>, %arg3: memref<1x128x32xf32, #tpu.memory_space<vmem>>, %arg4: memref<1x16x32xf32, #tpu.memory_space<vmem>>) attributes {dimension_semantics = [#tpu.dimension_semantics<parallel>, #tpu.dimension_semantics<parallel>], iteration_bounds = array<i64: 2, 1>, scalar_prefetch = 0 : i64, scratch_operands = 0 : i64, tpu.core_type = #tpu.core_type<tc>, window_params = [{transform_indices = @transform_0, window_bounds = array<i64: 1, 2, 128>}, {transform_indices = @transform_1, window_bounds = array<i64: 1, 128, 32>}, {transform_indices = @transform_2, window_bounds = array<i64: 1, 16, 32>}]} {
    %c16_i32 = arith.constant 16 : i32
    %0 = arith.muli %arg1, %c16_i32 : i32
    %1 = tpu.iota {dimensions = array<i32: 0>} : vector<16x128xi32>
    %2 = vector.broadcast %0 : i32 to vector<16x128xi32>
    %3 = arith.addi %2, %1 : vector<16x128xi32>
    %c0 = arith.constant 0 : index
    %c0_0 = arith.constant 0 : index
    %c0_1 = arith.constant 0 : index
    %4 = vector.load %arg2[%c0, %c0_0, %c0_1] : memref<1x2x128xi32, #tpu.memory_space<vmem>>, vector<1x2x128xi32>
    %5 = vector.shape_cast %4 : vector<1x2x128xi32> to vector<2x128xi32>
    %6 = vector.extract_strided_slice %5 {offsets = [0, 0], sizes = [1, 128], strides = [1, 1]} : vector<2x128xi32> to vector<1x128xi32>
    %7 = vector.extract_strided_slice %5 {offsets = [1, 0], sizes = [1, 128], strides = [1, 1]} : vector<2x128xi32> to vector<1x128xi32>
    %c0_2 = arith.constant 0 : index
    %c0_3 = arith.constant 0 : index
    %c0_4 = arith.constant 0 : index
    %8 = vector.load %arg3[%c0_2, %c0_3, %c0_4] : memref<1x128x32xf32, #tpu.memory_space<vmem>>, vector<1x128x32xf32>
    %9 = vector.shape_cast %8 : vector<1x128x32xf32> to vector<128x32xf32>
    %10 = vector.broadcast %6 : vector<1x128xi32> to vector<16x128xi32>
    %11 = arith.cmpi sge, %3, %10 : vector<16x128xi32>
    %12 = vector.broadcast %7 : vector<1x128xi32> to vector<16x128xi32>
    %13 = arith.cmpi slt, %3, %12 : vector<16x128xi32>
    %14 = arith.andi %11, %13 : vector<16x128xi1>
    %15 = arith.extui %14 : vector<16x128xi1> to vector<16x128xi32>
    %16 = arith.sitofp %15 : vector<16x128xi32> to vector<16x128xf32>
    %cst = arith.constant dense<0.000000e+00> : vector<16x32xf32>
    %17 = tpu.matmul %16, %9, %cst {dimension_numbers = #tpu.dot_dimension_numbers<[1], [0], [0], [1], [0, 0, 1, 1], [], []>, precision = #tpu.contract_precision<fp32>} : vector<16x128xf32>, vector<128x32xf32>, vector<16x32xf32> -> vector<16x32xf32>
    %c0_5 = arith.constant 0 : index
    %c0_6 = arith.constant 0 : index
    %c0_7 = arith.constant 0 : index
    %18 = vector.load %arg4[%c0_5, %c0_6, %c0_7] : memref<1x16x32xf32, #tpu.memory_space<vmem>>, vector<1x16x32xf32>
    %19 = vector.shape_cast %18 : vector<1x16x32xf32> to vector<16x32xf32>
    %20 = vector.shape_cast %17 : vector<16x32xf32> to vector<1x16x32xf32>
    tpu.vector_store %arg4[%c0_5, %c0_6, %c0_7], %20 {strides = array<i32>} : memref<1x16x32xf32, #tpu.memory_space<vmem>>, vector<1x16x32xf32>,
    return
  }
  func.func @transform_0(%arg0: i32, %arg1: i32) -> (i32, i32, i32) {
    %c0_i32 = arith.constant 0 : i32
    %c0_i32_0 = arith.constant 0 : i32
    %c0_i32_1 = arith.constant 0 : i32
    return %arg0, %c0_i32, %c0_i32_0 : i32, i32, i32
  }
  func.func @transform_1(%arg0: i32, %arg1: i32) -> (i32, i32, i32) {
    %c0_i32 = arith.constant 0 : i32
    %c0_i32_0 = arith.constant 0 : i32
    %c0_i32_1 = arith.constant 0 : i32
    return %arg0, %c0_i32, %c0_i32_0 : i32, i32, i32
  }
  func.func @transform_2(%arg0: i32, %arg1: i32) -> (i32, i32, i32) {
    %c0_i32 = arith.constant 0 : i32
    %c0_i32_0 = arith.constant 0 : i32
    return %arg0, %arg1, %c0_i32 : i32, i32, i32
  }
}

</mosaic_0001>

<bundles_post_ra>
// kernel: tpu_custom_call.1
= control target key start
LH: loop header
LB: loop body
LE: loop exit
PB: predicated region body
PF: predicated region fallthrough
CT: control target
= control target key end

     0   :  { %7 = vsyncpa [#allocation3], 0  ;;  %s2135_s0 = inlined_call_operand.vmem [shape: s32[2,2,128], index: 0, kind: input, shape index: {}]   ;;  %s2136_s1 = inlined_call_operand.vmem [shape: f32[2,128,32], index: 1, kind: input, shape index: {}]   ;;  %s2137_s2 = inlined_call_operand.hbm [shape: f32[2,16,32], index: 2, kind: output, shape index: {}]  }
   0x1   :  { %9 = vsyncpa [#allocation3 + $0x1], 0  ;;  %s1707_s9 = smov 0   ;;  %s1709_s10 = smov 0  }
   0x2   :  { %s1711_s11 = smov 0   ;;  %s1713_s12 = smov 0  }
   0x3   :  { %s1715_s13 = smov 0   ;;  %s1717_s14 = smov 0  }
   0x4 LB: > { %s1004_s15 = sadd.s32 4294967295, %s1685_s14   ;;  %s1005_s16 = sadd.s32 4294967294, %s1685_s14   ;;  %s1685_s14 = sphi %s1717_s14, %s15_s14   ;;  %s1681_s13 = sphi %s1715_s13, %s2148_s13   ;;  %s1677_s12 = sphi %s1713_s12, %s2147_s12   ;;  %s1673_s11 = sphi %s1711_s11, %s2146_s11   ;;  %s1669_s10 = sphi %s1709_s10, %s2145_s10   ;;  %s1665_s9 = sphi %s1707_s9, %s2144_s9  }
   0x5   : > { %s27_s17 = sadd.s32 1, %s1681_s13  ;;  %s88_s18 = sadd.s32 1, %s1673_s11 }
   0x6   : > { %p29_p0 = scmp.ge.s32.totalorder %s27_s17, 2  ;;  %p98_p1 = scmp.ne.s32.totalorder %s1673_s11, %s1669_s10 }
   0x7   : > { %p99_p2 = scmp.eq.s32.totalorder %s1004_s15, 1  ;;  %p104_p3 = scmp.ne.s32.totalorder %s1669_s10, %s1665_s9 }
   0x8   : > { %s2150_s17 = smov (%p29_p0, %s27_s17), 0  ;;  %p105_p5 = scmp.eq.s32.totalorder %s1005_s16, 1 }
   0x9   : > { %p1747_p4 = por %p99_p2, %p98_p1  ;;  %s83_s20 = ssub.s32 %s1681_s13, %s2150_s17 }
   0xa   : > { %p1008_p6 = scmp.ge.s32.totalorder %s1685_s14, 1  ;;  %p86_p7 = scmp.eq.s32.totalorder %s83_s20, 0 }
   0xb   : > { %p1754_p8 = por %p105_p5, %p104_p3  ;;  %p138_p9 = scmp.lt.s32.totalorder %s1685_s14, 3 }
   0xc   : > { %s1760_s22 = scalar_select %p86_p7, %s1673_s11, %s88_s18  }
   0xd   : > { %p139_p10 = pnand %p1008_p6, %p138_p9 }
   0xe   : > { %p164_p11 = scmp.lt.s32.totalorder (!%p139_p10), %s1677_s12, 1  ;;  %v175_v0 = vlaneseq (!%p139_p10)  ;;  %v1687_v33 = vmov (!%p139_p10), 0.0   ;;  %s161_s4 = sand.u32 (!%p139_p10), 1, %s1669_s10   ;;  %vm900_vm6 = vcmask (!%p139_p10), 261120  }
   0xf   : > { %142 = sbr.rel (%p139_p10) target bundleno = 357 (0x165), region = 28  ;;  %s1009_s5 = sshll.u32 (!%p139_p10), %s161_s4, 4 }
  0x10   : > { %v176_v1 = vshrl.u32 (!%p139_p10), %v175_v0, 7  ;;  %s163_s6 = scalar_lea.vmem (!%p139_p10), [#allocation2], %s1009_s5  ;;  %s1027_s8 = sshll.u32 (!%p139_p10), %s1677_s12, 8 }
  0x11   : > { %s919_s7 = sshll.u32 (!%p139_p10), %s163_s6, 4  ;;  %s2087_s18 = scalar_lea.hbm (!%p139_p10), %s2137_s2, %s1027_s8  ;;  %s2082_s7 = int_to_ptr.vmem [resolvable:$true] %s919_s7 }
  0x12   : > { %v200_v12 = vsub.s32 (!%p139_p10), 0, %v176_v1  ;;  %v206_v16 = vsub.s32 (!%p139_p10), 1, %v176_v1  ;;  %v177_v28 = vadd.s32 (!%p139_p10), 8, %v176_v1  ;;  %s1607_s20 = scalar_lea.vmem (!%p139_p10), %s2082_s7, 256 }
  0x13   : > { %p1608_p12 = scmp.ne.s32.totalorder (!%p139_p10), %s2082_s7, %s1607_s20 }
  0x15   : > { %p1609_p13 = pnand (!%p139_p10), %p1608_p12, %p1747_p4 }
  0x16   : > { %s165_s23 = scalar_select %p164_p11, %s1677_s12, 1 }
  0x17   : > { %s2089_s12 = scalar_lea.sflag [#allocation3], %s161_s4  ;;  %p1610_p0 = pneg %p1609_p13 }
  0x18   : > { %s1026_s24 = sshll.u32 %s165_s23, 7  ;;  %s1010_s28 = sshll.u32 %s165_s23, 1 }
  0x19   : > { %s1767_s27 = scalar_lea.vmem %s2136_s1, %s1026_s24  ;;  %s167_s3 = scalar_lea.vmem %s2135_s0, %s1010_s28 }
  0x1a   : > { %v182_v2 = vld [vmem:[%s1767_s27] sm:$0xff]  ;;  %v183_v3 = vld [vmem:[%s1767_s27 + $0x8] sm:$0xff]  ;;  %v1772_v4 = vld [vmem:[%s1767_s27 + $0x10] sm:$0xff]  ;;  %s1689_s23 = smov [#allocation2]  }
  0x1b   : > { %v217_v5 = vand.u32 4294901760, %v182_v2  ;;  %v220_v6 = vand.u32 4294901760, %v183_v3  ;;  %v1775_v7 = vld [vmem:[%s1767_s27 + $0x18] sm:$0xff]  ;;  %v223_v8 = vand.u32 4294901760, %v1772_v4  ;;  %v1779_v9 = vld [vmem:[%s1767_s27 + $0x20] sm:$0xff]  ;;  %v1782_v10 = vld [vmem:[%s1767_s27 + $0x28] sm:$0xff] }
  0x1c   : > { %v226_v11 = vand.u32 4294901760, %v1775_v7  ;;  %v229_v14 = vand.u32 4294901760, %v1779_v9  ;;  %v232_v15 = vand.u32 4294901760, %v1782_v10  ;;  %v1797_v18 = vld [vmem:[%s1767_s27 + $0x30] sm:$0xff]  ;;  %v1800_v19 = vld [vmem:[%s1767_s27 + $0x38] sm:$0xff]  ;;  %v1817_v26 = vld [vmem:[%s1767_s27 + $0x40] sm:$0xff] }
  0x1d   : > { %v1788_v13 = vpack.c.bf16 %v220_v6, %v217_v5  ;;  %v181_v20 = vld [vmem:[%s167_s3] sm:$0x3]  ;;  %v235_v23 = vand.u32 4294901760, %v1797_v18  ;;  %v238_v24 = vand.u32 4294901760, %v1800_v19  ;;  %v1820_v27 = vld [vmem:[%s1767_s27 + $0x48] sm:$0xff]  ;;  %v241_v31 = vand.u32 4294901760, %v1817_v26 }
  0x1e   : > { %v1794_v17 = vpack.c.bf16 %v226_v11, %v223_v8  ;;  %v201_v21 = vrot.slane %v181_v20, %v200_v12  ;;  %v1812_v22 = vpack.c.bf16 %v232_v15, %v229_v14  ;;  %v207_v25 = vrot.slane %v181_v20, %v206_v16  ;;  %v1841_v35 = vld [vmem:[%s1767_s27 + $0x50] sm:$0xff]  ;;  %v1844_v36 = vld [vmem:[%s1767_s27 + $0x58] sm:$0xff]  ;;  %v1870_v45 = vld [vmem:[%s1767_s27 + $0x60] sm:$0xff]  ;;  %s1611_s24 = sshll.u32 %s1689_s23, 4  ;;  %s1612_s24 = int_to_ptr.vmem [resolvable:$false] %s1611_s24 }
  0x1f   : > { %1347 = vmatprep.subr.bf16.mxu1 %v1788_v13  ;;  %1443 = vmatprep.subr.bf16.mxu0 %v1788_v13  ;;  %v1834_v30 = vpack.c.bf16 %v238_v24, %v235_v23  ;;  %v244_v32 = vand.u32 4294901760, %v1820_v27  ;;  %v1851_v39 = vsub.f32 %v182_v2, %v217_v5  ;;  %v1853_v40 = vsub.f32 %v183_v3, %v220_v6  ;;  %v1873_v46 = vld [vmem:[%s1767_s27 + $0x68] sm:$0xff]  ;;  %v1882_v49 = vld [vmem:[%s1767_s27 + $0x70] sm:$0xff]  ;;  %v1899_v57 = vld [vmem:[%s1767_s27 + $0x78] sm:$0xff]  ;;  %s1613_s25 = scalar_lea.vmem %s1612_s24, 512  ;;  %p1614_p1 = scmp.lt.s32.totalorder %s2082_s7, %s1612_s24 }
  0x20   : > { %1349 = vmatpush3.bf16.msra.mxu1 %v1788_v13  ;;  %1445 = vmatpush3.bf16.msra.mxu0 %v1788_v13  ;;  %vm202_vm0 = vcmp.ge.s32.totalorder %v176_v1, %v201_v21  ;;  %vm208_vm1 = vcmp.lt.s32.totalorder %v176_v1, %v207_v25  ;;  %vm203_vm3 = vcmp.ge.s32.totalorder %v177_v28, %v201_v21  ;;  %v247_v42 = vand.u32 4294901760, %v1841_v35  ;;  %p1615_p2 = scmp.lt.s32.totalorder %s1613_s25, %s1607_s20 }
  0x21   : > { %1351 = vmatprep.subr.bf16.mxu1 %v1794_v17  ;;  %1447 = vmatprep.subr.bf16.mxu0 %v1794_v17  ;;  %vm1824_vm2 = vmand %vm202_vm0, %vm208_vm1  ;;  %vm209_vm4 = vcmp.lt.s32.totalorder %v177_v28, %v207_v25  ;;  %v1861_v41 = vpack.c.bf16 %v244_v32, %v241_v31  ;;  %v250_v43 = vand.u32 4294901760, %v1844_v36  ;;  %v1877_v48 = vsub.f32 %v1772_v4, %v223_v8 }
  0x22   : > { %v1013_v34 = vsel %vm1824_vm2, 1.0, %v1687_v33  ;;  %vm1865_vm5 = vmand %vm203_vm3, %vm209_vm4  ;;  %v320_v52 = vand.u32 4294901760, %v1851_v39  ;;  %v327_v53 = vand.u32 4294901760, %v1853_v40  ;;  %v253_v55 = vand.u32 4294901760, %v1870_v45  ;;  %p1616_p3 = por %p1615_p2, %p1614_p1 }
  0x23   : > { %v1846_v37 = vsub.f32 %v1013_v34, %v1013_v34  ;;  %v1014_v50 = vsel %vm1865_vm5, 1.0, %v1687_v33  ;;  %v1894_v54 = vpack.c.bf16 %v250_v43, %v247_v42  ;;  %v256_v56 = vand.u32 4294901760, %v1873_v46 }
  0x24   : > { %1353 = vmatpush3.bf16.msra.mxu1 %v1794_v17  ;;  %1449 = vmatpush3.bf16.msra.mxu0 %v1794_v17  ;;  %v1904_v58 = vsub.f32 %v1775_v7, %v226_v11  ;;  %v259_v59 = vand.u32 4294901760, %v1882_v49  ;;  %v1907_v60 = vsub.f32 %v1014_v50, %v1014_v50  ;;  %v262_v61 = vand.u32 4294901760, %v1899_v57  ;;  %p1617_p5 = pnand %p1616_p3, %p1610_p0 }
  0x25   : > { %1355 = vmatprep.subr.bf16.mxu1 %v1812_v22  ;;  %1451 = vmatprep.subr.bf16.mxu0 %v1812_v22  ;;  %v299_v38 = vand.u32 4294901760, %v1846_v37  ;;  %v321_v62 = vsub.f32 %v1851_v39, %v320_v52  ;;  %v328_v63 = vsub.f32 %v1853_v40, %v327_v53  ;;  %v334_v0 = vand.u32 4294901760, %v1877_v48 }
  0x26   : > { %v1921_v1 = vpack.c.bf16 %v256_v56, %v253_v55  ;;  %v341_v2 = vand.u32 4294901760, %v1904_v58  ;;  %v1927_v3 = vsub.f32 %v1779_v9, %v229_v14  ;;  %v1932_v4 = vsub.f32 %v1782_v10, %v232_v15 }
  0x27   : > { %v300_v47 = vsub.f32 %v1846_v37, %v299_v38  ;;  %1273 = vmatprep.mubr.f32.mxu0 %v299_v38  ;;  %v309_v5 = vand.u32 4294901760, %v1907_v60  ;;  %v1938_v6 = vsub.f32 %v1797_v18, %v235_v23  ;;  %v322_v7 = vand.u32 4294901760, %v321_v62 }
  0x28   : > { %1357 = vmatpush3.bf16.msra.mxu1 %v1812_v22  ;;  %1453 = vmatpush3.bf16.msra.mxu0 %v1812_v22  ;;  %v329_v8 = vand.u32 4294901760, %v328_v63  ;;  %v335_v9 = vsub.f32 %v1877_v48, %v334_v0  ;;  %v1946_v10 = vsub.f32 %v1800_v19, %v238_v24  ;;  %v1954_v11 = vpack.c.bf16 %v262_v61, %v259_v59 }
  0x29   : > { %1359 = vmatprep.subr.bf16.mxu1 %v1834_v30  ;;  %1455 = vmatprep.subr.bf16.mxu0 %v1834_v30  ;;  %v301_v51 = vand.u32 4294901760, %v300_v47  ;;  %v342_v12 = vsub.f32 %v1904_v58, %v341_v2  ;;  %v348_v14 = vand.u32 4294901760, %v1927_v3  ;;  %v355_v15 = vand.u32 4294901760, %v1932_v4 }
  0x2a   : > { %v1474_v16 = vpack.c.bf16 %v327_v53, %v320_v52  ;;  %v310_v18 = vsub.f32 %v1907_v60, %v309_v5  ;;  %v362_v19 = vand.u32 4294901760, %v1938_v6  ;;  %v1378_v20 = vpack.c.bf16 %v329_v8, %v322_v7 }
  0x2b   : > { %1168 = vmatprep.mubr.f32.mxu1 %v301_v51  ;;  %v336_v21 = vand.u32 4294901760, %v335_v9  ;;  %v369_v23 = vand.u32 4294901760, %v1946_v10  ;;  %v1967_v24 = vsub.f32 %v1817_v26, %v241_v31  ;;  %v343_v25 = vand.u32 4294901760, %v342_v12 }
  0x2c   : > { %1361 = vmatpush3.bf16.msra.mxu1 %v1834_v30  ;;  %1457 = vmatpush3.bf16.msra.mxu0 %v1834_v30  ;;  %v349_v28 = vsub.f32 %v1927_v3, %v348_v14  ;;  %v356_v33 = vsub.f32 %v1932_v4, %v355_v15  ;;  %v1976_v34 = vsub.f32 %v1820_v27, %v244_v32  ;;  %v311_v38 = vand.u32 4294901760, %v310_v18 }
  0x2d   : > { %1363 = vmatprep.subr.bf16.mxu1 %v1861_v41  ;;  %1459 = vmatprep.subr.bf16.mxu0 %v1861_v41  ;;  %v363_v47 = vsub.f32 %v1938_v6, %v362_v19  ;;  %v1982_v26 = vsub.f32 %v1841_v35, %v247_v42  ;;  %v1478_v31 = vpack.c.bf16 %v341_v2, %v334_v0  ;;  %v376_v51 = vand.u32 4294901760, %v1967_v24 }
  0x2e   : > { %v370_v50 = vsub.f32 %v1946_v10, %v369_v23  ;;  %v1991_v27 = vsub.f32 %v1844_v36, %v250_v43  ;;  %v1382_v32 = vpack.c.bf16 %v343_v25, %v336_v21  ;;  %v350_v52 = vand.u32 4294901760, %v349_v28 }
  0x2f   : > { %v357_v35 = vand.u32 4294901760, %v356_v33  ;;  %v383_v42 = vand.u32 4294901760, %v1976_v34  ;;  %v1482_v53 = vpack.c.bf16 %v355_v15, %v348_v14  ;;  %v364_v62 = vand.u32 4294901760, %v363_v47 }
  0x30   : > { %1365 = vmatpush3.bf16.msra.mxu1 %v1861_v41  ;;  %1461 = vmatpush3.bf16.msra.mxu0 %v1861_v41  ;;  %v390_v63 = vand.u32 4294901760, %v1982_v26  ;;  %v371_v0 = vand.u32 4294901760, %v370_v50  ;;  %v377_v2 = vsub.f32 %v1967_v24, %v376_v51  ;;  %v397_v36 = vand.u32 4294901760, %v1991_v27 }
  0x31   : > { %1367 = vmatprep.subr.bf16.mxu1 %v1894_v54  ;;  %1463 = vmatprep.subr.bf16.mxu0 %v1894_v54  ;;  %v2000_v43 = vsub.f32 %v1870_v45, %v253_v55  ;;  %v1386_v7 = vpack.c.bf16 %v357_v35, %v350_v52  ;;  %v2006_v8 = vsub.f32 %v1873_v46, %v256_v56  ;;  %v1688_v9 = vmov 1.0  }
  0x32   : > { %v1486_v45 = vpack.c.bf16 %v369_v23, %v362_v19  ;;  %v391_v55 = vsub.f32 %v1982_v26, %v390_v63  ;;  %v1390_v12 = vpack.c.bf16 %v371_v0, %v364_v62  ;;  %v378_v14 = vand.u32 4294901760, %v377_v2 }
  0x33   : > { %v398_v15 = vsub.f32 %v1991_v27, %v397_v36  ;;  %v404_v46 = vand.u32 4294901760, %v2000_v43  ;;  %v2021_v18 = vsub.f32 %v1882_v49, %v259_v59  ;;  %v2026_v19 = vsub.f32 %v1899_v57, %v262_v61 }
  0x34   : > { %1369 = vmatpush3.bf16.msra.mxu1 %v1894_v54  ;;  %1465 = vmatpush3.bf16.msra.mxu0 %v1894_v54  ;;  %v392_v21 = vand.u32 4294901760, %v391_v55  ;;  %v1494_v61 = vpack.c.bf16 %v397_v36, %v390_v63  ;;  %v1410_v62 = vpack.c.bf16 %v1853_v40, %v1851_v39  ;;  %v1414_v63 = vpack.c.bf16 %v1904_v58, %v1877_v48 }
  0x35   : > { %1371 = vmatprep.subr.bf16.mxu1 %v1921_v1  ;;  %1467 = vmatprep.subr.bf16.mxu0 %v1921_v1  ;;  %v399_v23 = vand.u32 4294901760, %v398_v15  ;;  %v405_v25 = vsub.f32 %v2000_v43, %v404_v46  ;;  %v418_v49 = vand.u32 4294901760, %v2021_v18  ;;  %v425_v59 = vand.u32 4294901760, %v2026_v19 }
  0x36   : > { %v1418_v39 = vpack.c.bf16 %v1932_v4, %v1927_v3  ;;  %v1438_v29 = vpack.c.bf16 %v2026_v19, %v2021_v18 }
  0x37   : > { %v1398_v57 = vpack.c.bf16 %v399_v23, %v392_v21  ;;  %v426_v50 = vsub.f32 %v2026_v19, %v425_v59 }
  0x38   : > { %1373 = vmatpush3.bf16.msra.mxu1 %v1921_v1  ;;  %1469 = vmatpush3.bf16.msra.mxu0 %v1921_v1 }
  0x39   : > { %1375 = vmatprep.subr.bf16.mxu1 %v1954_v11  ;;  %1471 = vmatprep.subr.bf16.mxu0 %v1954_v11  ;;  %v427_v35 = vand.u32 4294901760, %v426_v50 }
  0x3c   : > { %1377 = vmatpush3.bf16.msra.mxu1 %v1954_v11  ;;  %1473 = vmatpush3.bf16.msra.mxu0 %v1954_v11 }
  0x3d   : > { %1379 = vmatprep.subr.bf16.mxu1 %v1378_v20  ;;  %1475 = vmatprep.subr.bf16.mxu0 %v1474_v16 }
  0x3f   : > { %1169 = vmatmul.mubr.f32.vlgmr.msra.gmra.mrb[0].mxu1 %v311_v38  ;;  %1274 = vmatmul.mubr.f32.vlgmr.msra.gmra.mrb[0].mxu0 %v309_v5  ;;  %v384_v5 = vsub.f32 %v1976_v34, %v383_v42  ;;  %v406_v38 = vand.u32 4294901760, %v405_v25 }
  0x40   : > { %1381 = vmatpush3.bf16.msra.mxu1 %v1378_v20  ;;  %1477 = vmatpush3.bf16.msra.mxu0 %v1474_v16  ;;  %v411_v16 = vand.u32 4294901760, %v2006_v8  ;;  %v1490_v20 = vpack.c.bf16 %v383_v42, %v376_v51 }
  0x41   : > { %1383 = vmatprep.subr.bf16.mxu1 %v1382_v32  ;;  %1479 = vmatprep.subr.bf16.mxu0 %v1478_v31  ;;  %v385_v56 = vand.u32 4294901760, %v384_v5 }
  0x42   : > { %1203 = vmatprep.mubr.msk.f32.mxu1 %vm1824_vm2, %v1688_v9  ;;  %1308 = vmatprep.mubr.msk.f32.mxu0 %vm1824_vm2, %v1688_v9  ;;  %v412_v33 = vsub.f32 %v2006_v8, %v411_v16 }
  0x43   : > { %v1394_v28 = vpack.c.bf16 %v385_v56, %v378_v14 }
  0x44   : > { %1385 = vmatpush3.bf16.msra.mxu1 %v1382_v32  ;;  %1481 = vmatpush3.bf16.msra.mxu0 %v1478_v31  ;;  %v413_v47 = vand.u32 4294901760, %v412_v33  ;;  %v419_v31 = vsub.f32 %v2021_v18, %v418_v49  ;;  %v1498_v32 = vpack.c.bf16 %v411_v16, %v404_v46 }
  0x45   : > { %1387 = vmatprep.subr.bf16.mxu1 %v1386_v7  ;;  %1483 = vmatprep.subr.bf16.mxu0 %v1482_v53 }
  0x46   : > { %v1402_v51 = vpack.c.bf16 %v413_v47, %v406_v38  ;;  %v420_v52 = vand.u32 4294901760, %v419_v31 }
  0x48   : > { %1389 = vmatpush3.bf16.msra.mxu1 %v1386_v7  ;;  %1485 = vmatpush3.bf16.msra.mxu0 %v1482_v53  ;;  %v1406_v42 = vpack.c.bf16 %v427_v35, %v420_v52  ;;  %v1502_v53 = vpack.c.bf16 %v425_v59, %v418_v49 }
  0x49   : > { %1391 = vmatprep.subr.bf16.mxu1 %v1390_v12  ;;  %1487 = vmatprep.subr.bf16.mxu0 %v1486_v45 }
  0x4c   : > { %1393 = vmatpush3.bf16.msra.mxu1 %v1390_v12  ;;  %1489 = vmatpush3.bf16.msra.mxu0 %v1486_v45 }
  0x4d   : > { %1395 = vmatprep.subr.bf16.mxu1 %v1394_v28  ;;  %1491 = vmatprep.subr.bf16.mxu0 %v1490_v20 }
  0x50   : > { %1397 = vmatpush3.bf16.msra.mxu1 %v1394_v28  ;;  %1493 = vmatpush3.bf16.msra.mxu0 %v1490_v20 }
  0x51   : > { %1399 = vmatprep.subr.bf16.mxu1 %v1398_v57  ;;  %1495 = vmatprep.subr.bf16.mxu0 %v1494_v61 }
  0x54   : > { %1401 = vmatpush3.bf16.msra.mxu1 %v1398_v57  ;;  %1497 = vmatpush3.bf16.msra.mxu0 %v1494_v61 }
  0x55   : > { %1403 = vmatprep.subr.bf16.mxu1 %v1402_v51  ;;  %1499 = vmatprep.subr.bf16.mxu0 %v1498_v32 }
  0x58   : > { %1405 = vmatpush3.bf16.msra.mxu1 %v1402_v51  ;;  %1501 = vmatpush3.bf16.msra.mxu0 %v1498_v32 }
  0x59   : > { %1407 = vmatprep.subr.bf16.mxu1 %v1406_v42  ;;  %1503 = vmatprep.subr.bf16.mxu0 %v1502_v53 }
  0x5c   : > { %1409 = vmatpush3.bf16.msra.mxu1 %v1406_v42  ;;  %1505 = vmatpush3.bf16.msra.mxu0 %v1502_v53 }
  0x5d   : > { %1411 = vmatprep.subr.bf16.mxu1 %v1410_v62  ;;  %1507 = vmatprep.subr.bf16.mxu0 %v1788_v13 }
  0x5f   : > { %1204 = vmatmul.mubr.msk.f32.vlgmr.msra.gmra.mrb[0].mxu1 %vm1865_vm5, %v1688_v9  ;;  %1309 = vmatmul.mubr.msk.f32.vlgmr.msra.gmra.mrb[0].mxu0 %vm1865_vm5, %v1688_v9 }
  0x60   : > { %1413 = vmatpush3.bf16.msra.mxu1 %v1410_v62  ;;  %1509 = vmatpush3.bf16.msra.mxu0 %v1788_v13  ;;  %v1422_v13 = vpack.c.bf16 %v1946_v10, %v1938_v6 }
  0x61   : > { %1415 = vmatprep.subr.bf16.mxu1 %v1414_v63  ;;  %1511 = vmatprep.subr.bf16.mxu0 %v1794_v17 }
  0x62   : > { %1238 = vmatprep.mubr.f32.mxu1 %v1846_v37  ;;  %1343 = vmatprep.mubr.msk.f32.mxu0 %vm1824_vm2, %v1688_v9  ;;  %v1426_v37 = vpack.c.bf16 %v1976_v34, %v1967_v24 }
  0x64   : > { %1417 = vmatpush3.bf16.msra.mxu1 %v1414_v63  ;;  %1513 = vmatpush3.bf16.msra.mxu0 %v1794_v17  ;;  %v1430_v17 = vpack.c.bf16 %v1991_v27, %v1982_v26 }
  0x65   : > { %1419 = vmatprep.subr.bf16.mxu1 %v1418_v39  ;;  %1515 = vmatprep.subr.bf16.mxu0 %v1812_v22 }
  0x68   : > { %1421 = vmatpush3.bf16.msra.mxu1 %v1418_v39  ;;  %1517 = vmatpush3.bf16.msra.mxu0 %v1812_v22  ;;  %v1434_v22 = vpack.c.bf16 %v2006_v8, %v2000_v43 }
  0x69   : > { %1423 = vmatprep.subr.bf16.mxu1 %v1422_v13  ;;  %1519 = vmatprep.subr.bf16.mxu0 %v1834_v30 }
  0x6c   : > { %1425 = vmatpush3.bf16.msra.mxu1 %v1422_v13  ;;  %1521 = vmatpush3.bf16.msra.mxu0 %v1834_v30 }
  0x6d   : > { %1427 = vmatprep.subr.bf16.mxu1 %v1426_v37  ;;  %1523 = vmatprep.subr.bf16.mxu0 %v1861_v41 }
  0x70   : > { %1429 = vmatpush3.bf16.msra.mxu1 %v1426_v37  ;;  %1525 = vmatpush3.bf16.msra.mxu0 %v1861_v41 }
  0x71   : > { %1431 = vmatprep.subr.bf16.mxu1 %v1430_v17  ;;  %1527 = vmatprep.subr.bf16.mxu0 %v1894_v54 }
  0x74   : > { %1433 = vmatpush3.bf16.msra.mxu1 %v1430_v17  ;;  %1529 = vmatpush3.bf16.msra.mxu0 %v1894_v54 }
  0x75   : > { %1435 = vmatprep.subr.bf16.mxu1 %v1434_v22  ;;  %1531 = vmatprep.subr.bf16.mxu0 %v1921_v1 }
  0x78   : > { %1437 = vmatpush3.bf16.msra.mxu1 %v1434_v22  ;;  %1533 = vmatpush3.bf16.msra.mxu0 %v1921_v1 }
  0x79   : > { %1439 = vmatprep.subr.bf16.mxu1 %v1438_v29  ;;  %1535 = vmatprep.subr.bf16.mxu0 %v1954_v11 }
  0x7c   : > { %1441 = vmatpush3.bf16.msra.mxu1 %v1438_v29  ;;  %1537 = vmatpush3.bf16.msra.mxu0 %v1954_v11 }
  0x7f   : > { %1239 = vmatmul.mubr.f32.vlgmr.msra.gmra.mrb[0].mxu1 %v1907_v60  ;;  %1344 = vmatmul.mubr.msk.f32.vlgmr.msra.gmra.mrb[0].mxu0 %vm1865_vm5, %v1688_v9 }
 0x152   : > { %v1240_v30 = vpop.f32.mrb[0].mxu1  ;;  %v1345_v40 = vpop.f32.mrb[0].mxu0 }
 0x153   : > { %v1538_v41 = vadd.f32 %v1345_v40, %v1240_v30  ;;  %v574_v48 = vpop.f32.mrb[1].mxu1  ;;  %v890_v54 = vpop.f32.mrb[1].mxu0 }
 0x154   : > { %v1539_v44 = vadd.f32 %v890_v54, %v574_v48 }
 0x155   : > { %902 = vst.msk [vmem:[%s163_s6 + $0x8] sm:$0xff] %vm900_vm6, %v1538_v41 }
 0x156   : > { %901 = vst.msk [vmem:[%s163_s6] sm:$0xff] %vm900_vm6, %v1539_v44 }
 0x157   : > { %1620 = shalt.err (!%p1617_p5)
}
 0x158   : > { %s1621_s26 = scalar_lea.hbm %s2087_s18, 256  ;;  %s1625_s29 = scalar_lea.hbm %s2137_s2, 512 }
 0x159   : > { %p1622_p6 = scmp.ne.s32.totalorder %s2087_s18, %s1621_s26  ;;  %p1626_p10 = scmp.lt.u32.totalorder %s2087_s18, %s2137_s2 }
 0x15a   : > { %p1627_p11 = scmp.lt.u32.totalorder %s1625_s29, %s1621_s26  ;;  %p1629_p13 = scmp.lt.u32.totalorder %s1621_s26, %s2087_s18 }
 0x15b   : > { %p1623_p7 = pnand %p1622_p6, %p1747_p4 }
 0x15c   : > { %p1628_p12 = por %p1627_p11, %p1626_p10 }
 0x15d   : > { %p1624_p9 = pneg %p1623_p7 }
 0x15e   : > { %p1630_p0 = por %p1629_p13, %p1628_p12 }
 0x160   : > { %p1631_p1 = pnand %p1630_p0, %p1624_p9 }
 0x162   : > { %1634 = shalt.err (!%p1631_p1)
}
 0x163   : > { %s1690_s4 = smov 128   ;;  %s1691_s5 = smov 8  }
 0x164   : > { %1548 = dma.vmem_to_hbm [thread:$0]  (%p1747_p4), %s2082_s7, 256, %s2087_s18, %s2089_s12, %s1690_s4, %s1690_s4, %s1691_s5  }
 0x165 PF: > { %p1554_p2 = scmp.ge.s32.totalorder %s1685_s14, 2  ;;  %s934_s6 = sand.u32 1, %s1665_s9  }
 0x166   : > { %s935_s8 = scalar_lea.sflag [#allocation3], %s934_s6 }
 0x167   : > { %p1551_p3 = pnand %p1554_p2, %p1754_p8 }
 0x169   : > { %1660 = dma.done.wait (!%p1551_p3), %s935_s8, 256  }
 0x16a   : > { %1662 = vsyncadd (!%p1551_p3), %s935_s8, 4294967040  ;;  %s15_s14 = sadd.s32 1, %s1685_s14   ;;  %s2144_s9 = smov %s1669_s10 }
 0x16b   : > { %p12_p5 = scmp.ge.s32.totalorder %s15_s14, 4   ;;  %s2145_s10 = smov %s1673_s11 }
 0x16c   : > { %s2146_s11 = smov %s1760_s22  ;;  %s2147_s12 = smov %s1681_s13 }
 0x16d   : > { %s2148_s13 = smov %s2150_s17  ;;  %14 = sbr.rel (!%p12_p5) target bundleno = 4 (0x4), region = 66 }
 0x174   :  { %940 = vsyncpa [#allocation3], 1 }
 0x175   :  { %942 = vsyncpa [#allocation3 + $0x1], 1 }

</bundles_post_ra>
